<compile_context>
chip_gen: v7x
topology: tpu7x:2x2x1
jax: 0.10.0
libtpu: 0.0.40
codegen_flags: <defaults>
</compile_context>

<pallas_src>
import functools

import jax
import jax.numpy as jnp
from jax.experimental import pallas as pl
from jax.experimental.pallas import tpu as pltpu

_BF = jnp.bfloat16


def _bf16(x):
    return x.astype(_BF)


def _dot(a, b):
    """MXU matmul with f32 accumulation (operands bf16)."""
    return jnp.dot(a, b, preferred_element_type=jnp.float32)


def _nbytes(a):
    return int(a.size) * jnp.dtype(a.dtype).itemsize


# --------------------------------------------------------------------------- #
# Kernels (one per G application + one tiny pooling kernel)
# --------------------------------------------------------------------------- #
def _enc1_kernel(g_ref, xaug_ref, w1a_ref, h1aug_ref, *, wf):
    """h1 = relu(G @ (X @ We1 + be1)); output [h1 | 1] in bf16."""
    prod = _dot(g_ref[...], xaug_ref[...])                  # [tm, F+1] f32
    h1 = jnp.maximum(_dot(_bf16(prod), w1a_ref[...]), 0.0)  # [tm, WF]  f32
    h1aug_ref[:, :wf] = _bf16(h1)
    h1aug_ref[:, wf:] = jnp.ones((h1.shape[0], 1), _BF)


def _enc2_gru_kernel(g_ref, h1res_ref, h1row_ref,
                     we2a_ref, wfca_ref, wg1_ref, wg2_ref, w2_ref,
                     bgs_ref, b2_ref,
                     outs_ref, outsaug_ref, *, e):
    """Encoder layer 2 + fc + GRU-style gated fusion, all per row block."""
    ge = _dot(g_ref[...], h1res_ref[...])                   # [tm, WF+1]
    x_e = _dot(_bf16(ge), we2a_ref[...])                    # [tm, E]  (conv out)
    x_e1 = _dot(h1row_ref[...], wfca_ref[...])              # [tm, E]  (fc out)

    # fused gate pre-activations: [update | reset | candidate(fc1 part)]
    s = (_dot(_bf16(x_e1), wg1_ref[...])
         + _dot(_bf16(x_e), wg2_ref[...])
         + bgs_ref[...])                                     # [tm, 3E]
    z = jax.nn.sigmoid(s[:, :e])
    r = jax.nn.sigmoid(s[:, e:2 * e])
    cand = jnp.tanh(s[:, 2 * e:] + _dot(_bf16(r * x_e), w2_ref[...]) + b2_ref[...])
    outs = z * cand + (1.0 - z) * x_e                        # [tm, E] f32

    outs_ref[...] = outs
    outsaug_ref[:, :e] = _bf16(outs)
    outsaug_ref[:, e:] = jnp.ones((outs.shape[0], 1), _BF)


def _pool_kernel(outs_ref, proto_ref, *, n_pool):
    """AttentionPooling over nodes (dim 0)."""
    o = outs_ref[...]
    mean = jnp.mean(o, axis=0, keepdims=True)
    d = (o - mean) ** 2
    v = jnp.sum(d, axis=0, keepdims=True) * (1.0 / n_pool)
    e = d / (4.0 * (v + 0.001)) + 0.5
    proto_ref[...] = jnp.sum(o * jax.nn.sigmoid(e), axis=0, keepdims=True)


def _disdec1_kernel(g_ref, outsaug_ref, wdr1a_ref, wdr2_ref, bdr2_ref, t_ref):
    """Fused discriminator/decoder layer 1 + block-diagonal layer-2 weights.

    GradientReversalLayer is identity in the forward pass, so discriminator and
    decoder share `outs` and fuse into one G pass.
    """
    prod = _dot(g_ref[...], outsaug_ref[...])                # [tm, E+1]
    y = jnp.maximum(_dot(_bf16(prod), wdr1a_ref[...]), 0.0)  # [tm, WE+WF]
    t = _dot(_bf16(y), wdr2_ref[...]) + bdr2_ref[...]        # [tm, 2+F]
    t_ref[...] = _bf16(t)


def _disdec2_kernel(g_ref, tres_ref, u_ref):
    """Final G application for both heads: u = G @ t = [xdis | x_de]."""
    u_ref[...] = _dot(g_ref[...], tres_ref[...])


# --------------------------------------------------------------------------- #
# Parameter preparation (once, in the wrapper)
# --------------------------------------------------------------------------- #
def _prepare_params(params, f, e, width):
    wf, we = width * f, width * e
    # biases folded as an extra weight row (pairs with the ones column of the LHS)
    w1a = jnp.concatenate([params["we1"], params["be1"]], axis=0)     # [F+1, WF]
    we2a = jnp.concatenate([params["we2"], params["be2"]], axis=0)    # [WF+1, E]
    wfca = jnp.concatenate([params["wfc"], params["bfc"]], axis=0)    # [WF+1, E]
    # GRU gate fusion: [update | reset | candidate], wg2/bg2 zero-padded to 3E
    wg1 = jnp.concatenate([params["w1u"], params["w1r"], params["w1"]], axis=1)
    wg2 = jnp.concatenate([params["w2u"], params["w2r"],
                           jnp.zeros((e, e), jnp.float32)], axis=1)
    bgs = (jnp.concatenate([params["b1u"], params["b1r"], params["b1"]], axis=1)
           + jnp.concatenate([params["b2u"], params["b2r"],
                              jnp.zeros((1, e), jnp.float32)], axis=1))
    # discriminator + decoder layer 1 fused (shared LHS), bias folded
    wd1r1 = jnp.concatenate([params["wd1"], params["wr1"]], axis=1)   # [E, WE+WF]
    bd1r1 = jnp.concatenate([params["bd1"], params["br1"]], axis=1)   # [1, WE+WF]
    wdr1a = jnp.concatenate([wd1r1, bd1r1], axis=0)                   # [E+1, WE+WF]
    # block-diagonal fusion of the two second-layer weights
    wdr2 = jnp.zeros((we + wf, 2 + f), jnp.float32)
    wdr2 = wdr2.at[:we, :2].set(params["wd2"]).at[we:, 2:].set(params["wr2"])
    bdr2 = jnp.concatenate([params["bd2"], params["br2"]], axis=1)    # [1, 2+F]
    return dict(
        w1a=_bf16(w1a), we2a=_bf16(we2a), wfca=_bf16(wfca),
        wg1=_bf16(wg1), wg2=_bf16(wg2), w2=_bf16(params["w2"]),
        bgs=bgs.astype(jnp.float32), b2=params["b2"].astype(jnp.float32),
        wdr1a=_bf16(wdr1a), wdr2=_bf16(wdr2), bdr2=bdr2.astype(jnp.float32),
    )


# --------------------------------------------------------------------------- #
# Tile / VMEM sizing
# --------------------------------------------------------------------------- #
def _vmem_capacity_bytes():
    try:
        return int(pltpu.get_tpu_info().vmem_capacity_bytes)
    except Exception:
        return 64 << 20        # conservative fallback (v7x-sized)


def _pick_tm(n, budget, resident_bytes, per_row_extra):
    """Largest G row-tile (rows) such that double-buffered tiles fit the budget."""
    per_row = 4 * n + per_row_extra          # 2 x bf16 G row + streamed outputs
    avail = budget - resident_bytes - (6 << 20)
    tm = avail // max(per_row, 1)
    tm = int(max(8, min(tm, 1024)))
    if tm >= n:
        return n
    if tm >= 256:
        tm = (tm // 256) * 256
    else:
        tm = (tm // 8) * 8
    return max(tm, 8)


# --------------------------------------------------------------------------- #
# Forward pass
# --------------------------------------------------------------------------- #
def modelp_forward(x, g, params, input_size, max_tile_rows=None):
    n, f = x.shape
    e = params["w2u"].shape[0]
    wf = params["we1"].shape[1]
    width = wf // f
    we = width * e
    assert n == input_size, "AttentionPooling normalization uses input_size - 1"

    p = _prepare_params(params, f, e, width)
    gb = _bf16(g)                                            # streamed [N, N] bf16
    x_aug = jnp.concatenate([_bf16(x), jnp.ones((n, 1), _BF)], axis=1)  # [N, F+1]

    # ---- VMEM budget / G row-tile selection ------------------------------- #
    cap = _vmem_capacity_bytes()
    budget = max(int(0.75 * cap), 16 << 20)     # ~48 MiB on v7x, ~96 MiB on v5e/v6e
    resident_max = max(
        _nbytes(x_aug) + _nbytes(p["w1a"]),
        n * (wf + 1) * 2 + sum(_nbytes(p[k]) for k in
                               ("we2a", "wfca", "wg1", "wg2", "w2", "bgs", "b2")),
        n * (e + 1) * 2 + _nbytes(p["wdr1a"]) + _nbytes(p["wdr2"]) + _nbytes(p["bdr2"]),
        n * (2 + f) * 2,
    )
    per_row_extra = 2 * max((wf + 1) * 2,
                            e * 4 + (e + 1) * 2 + (wf + 1) * 2,
                            (2 + f) * 2,
                            (2 + f) * 4)
    tm = _pick_tm(n, budget, resident_max, per_row_extra)
    if max_tile_rows is not None:
        tm = max(8, min(tm, max_tile_rows))
    tm = min(tm, n)
    grid = (pl.cdiv(n, tm),)

    vmem_limit = resident_max + 2 * (tm * n * 2) + tm * per_row_extra + (8 << 20)
    vmem_limit = int(min(max(vmem_limit, 16 << 20), budget))

    cparams = pltpu.CompilerParams(
        dimension_semantics=("parallel",),       # v7x: shard row blocks over 2 TCs
        vmem_limit_bytes=vmem_limit)

    def g_spec():
        return pl.BlockSpec((tm, n), lambda i: (i, 0))

    def row_spec(cols):
        return pl.BlockSpec((tm, cols), lambda i: (i, 0))

    def res_spec(arr):
        # full array resident in VMEM; constant block index -> fetched once
        return pl.BlockSpec(arr.shape, lambda i: (0,) * arr.ndim)

    # ---- phase 1: encoder layer 1 ----------------------------------------- #
    h1_aug = pl.pallas_call(
        functools.partial(_enc1_kernel, wf=wf),
        out_shape=jax.ShapeDtypeStruct((n, wf + 1), _BF),
        grid=grid,
        in_specs=[g_spec(), res_spec(x_aug), res_spec(p["w1a"])],
        out_specs=row_spec(wf + 1),
        compiler_params=cparams,
    )(gb, x_aug, p["w1a"])

    # ---- phase 2: encoder layer 2 + fc + GRU gating ------------------------ #
    outs, outs_aug = pl.pallas_call(
        functools.partial(_enc2_gru_kernel, e=e),
        out_shape=(jax.ShapeDtypeStruct((n, e), jnp.float32),
                   jax.ShapeDtypeStruct((n, e + 1), _BF)),
        grid=grid,
        in_specs=[g_spec(), res_spec(h1_aug), row_spec(wf + 1),
                  res_spec(p["we2a"]), res_spec(p["wfca"]),
                  res_spec(p["wg1"]), res_spec(p["wg2"]), res_spec(p["w2"]),
                  res_spec(p["bgs"]), res_spec(p["b2"])],
        out_specs=(row_spec(e), row_spec(e + 1)),
        compiler_params=cparams,
    )(gb, h1_aug, h1_aug, p["we2a"], p["wfca"], p["wg1"], p["wg2"], p["w2"],
      p["bgs"], p["b2"])

    # ---- attention pooling (tiny, grid-less) ------------------------------- #
    vmem_full = pl.BlockSpec(memory_space=pltpu.MemorySpace.VMEM)
    proto = pl.pallas_call(
        functools.partial(_pool_kernel, n_pool=float(input_size - 1)),
        out_shape=jax.ShapeDtypeStruct((1, e), jnp.float32),
        in_specs=[vmem_full],
        out_specs=vmem_full,
        compiler_params=pltpu.CompilerParams(
            vmem_limit_bytes=int(max(4 * _nbytes(outs) + (4 << 20), 16 << 20))),
    )(outs)

    # ---- phase 3: fused discriminator/decoder layer 1 (+ layer-2 weights) --- #
    t = pl.pallas_call(
        _disdec1_kernel,
        out_shape=jax.ShapeDtypeStruct((n, 2 + f), _BF),
        grid=grid,
        in_specs=[g_spec(), res_spec(outs_aug),
                  res_spec(p["wdr1a"]), res_spec(p["wdr2"]), res_spec(p["bdr2"])],
        out_specs=row_spec(2 + f),
        compiler_params=cparams,
    )(gb, outs_aug, p["wdr1a"], p["wdr2"], p["bdr2"])

    # ---- phase 4: final G application for both heads ------------------------ #
    u = pl.pallas_call(
        _disdec2_kernel,
        out_shape=jax.ShapeDtypeStruct((n, 2 + f), jnp.float32),
        grid=grid,
        in_specs=[g_spec(), res_spec(t)],
        out_specs=row_spec(2 + f),
        compiler_params=cparams,
    )(gb, t)

    xdis = u[:, :2]
    x_de = u[:, 2:2 + f]
    return outs, x_de, proto.reshape(-1), xdis


# --------------------------------------------------------------------------- #
# Parameter / hypergraph construction for the demo
# --------------------------------------------------------------------------- #
def init_params(key, f, e, width):
    wf, we = width * f, width * e
    shapes = {
        "we1": (f, wf), "be1": (1, wf),
        "we2": (wf, e), "be2": (1, e),
        "wfc": (wf, e), "bfc": (1, e),
        "w1u": (e, e), "b1u": (1, e),
        "w2u": (e, e), "b2u": (1, e),
        "w1r": (e, e), "b1r": (1, e),
        "w2r": (e, e), "b2r": (1, e),
        "w1": (e, e), "b1": (1, e),
        "w2": (e, e), "b2": (1, e),
        "wd1": (e, we), "bd1": (1, we),
        "wd2": (we, 2), "bd2": (1, 2),
        "wr1": (e, wf), "br1": (1, wf),
        "wr2": (wf, f), "br2": (1, f),
    }
    params = {}
    for i, name in enumerate(sorted(shapes)):
        k = jax.random.fold_in(key, i)
        params[name] = 0.1 * jax.random.normal(k, shapes[name], dtype=jnp.float32)
    return params


def build_hgnn_propagation(key, n_nodes, n_edges):
    """Dense HGNN smoothing matrix  G = Dv^-1/2 H De^-1 H^T Dv^-1/2."""
    h = (jax.random.uniform(key, (n_nodes, n_edges)) > 0.5).astype(jnp.float32)
    h = h.at[:, 0].set(1.0)   # every node belongs to at least one hyperedge
    dv_inv_sqrt = 1.0 / jnp.sqrt(h.sum(axis=1))
    de_inv = 1.0 / h.sum(axis=0)
    g = (dv_inv_sqrt[:, None] * h) @ (de_inv[:, None] * h.T) * dv_inv_sqrt[None, :]
    return g.astype(jnp.float32)


if __name__ == "__main__":
    key = jax.random.PRNGKey(0)
    # input_size (nodes) = 64, num_features = 16, num_embedding = 32, width = 2
    N, F, E, WIDTH = 64, 16, 32, 2
    kx, kg, kp = jax.random.split(key, 3)

    X = jax.random.normal(kx, (N, F), dtype=jnp.float32)
    G = build_hgnn_propagation(kg, N, 8)
    params = init_params(kp, F, E, WIDTH)

    # max_tile_rows=16 forces grid=(4,) so the row-tiled/pipelined path is exercised.
    outs, x_de, proto, xdis = modelp_forward(X, G, params, input_size=N,
                                             max_tile_rows=16)
    jax.block_until_ready((outs, x_de, proto, xdis))

    assert outs.shape == (N, E)
    assert x_de.shape == (N, F)
    assert proto.shape == (E,)
    assert xdis.shape == (N, 2)
    assert bool(jnp.all(jnp.isfinite(outs))) and bool(jnp.all(jnp.isfinite(x_de)))
    print("KERNEL_OK")
</pallas_src>

<mosaic_0001>
module attributes {stable_mosaic.version = 11 : i64} {
  func.func @_enc1_kernel(%arg0: i32, %arg1: memref<16x64xbf16, #tpu.memory_space<vmem>>, %arg2: memref<64x17xbf16, #tpu.memory_space<vmem>>, %arg3: memref<17x32xbf16, #tpu.memory_space<vmem>>, %arg4: memref<16x33xbf16, #tpu.memory_space<vmem>>) attributes {dimension_semantics = [#tpu.dimension_semantics<parallel>], iteration_bounds = array<i64: 4>, scalar_prefetch = 0 : i64, scratch_operands = 0 : i64, tpu.core_type = #tpu.core_type<tc>, window_params = [{transform_indices = @transform_0, window_bounds = array<i64: 16, 64>}, {pipeline_mode = #tpu.pipeline_mode<synchronous>, transform_indices = @transform_1, window_bounds = array<i64: 64, 17>}, {pipeline_mode = #tpu.pipeline_mode<synchronous>, transform_indices = @transform_2, window_bounds = array<i64: 17, 32>}, {transform_indices = @transform_3, window_bounds = array<i64: 16, 33>}]} {
    %c0 = arith.constant 0 : index
    %c0_0 = arith.constant 0 : index
    %0 = vector.load %arg1[%c0, %c0_0] : memref<16x64xbf16, #tpu.memory_space<vmem>>, vector<16x64xbf16>
    %c0_1 = arith.constant 0 : index
    %c0_2 = arith.constant 0 : index
    %1 = vector.load %arg2[%c0_1, %c0_2] : memref<64x17xbf16, #tpu.memory_space<vmem>>, vector<64x17xbf16>
    %cst = arith.constant dense<0.000000e+00> : vector<16x17xf32>
    %2 = tpu.matmul %0, %1, %cst {dimension_numbers = #tpu.dot_dimension_numbers<[1], [0], [0], [1], [0, 0, 1, 1], [], []>} : vector<16x64xbf16>, vector<64x17xbf16>, vector<16x17xf32> -> vector<16x17xf32>
    %3 = arith.truncf %2 : vector<16x17xf32> to vector<16x17xbf16>
    %c0_3 = arith.constant 0 : index
    %c0_4 = arith.constant 0 : index
    %4 = vector.load %arg3[%c0_3, %c0_4] : memref<17x32xbf16, #tpu.memory_space<vmem>>, vector<17x32xbf16>
    %cst_5 = arith.constant dense<0.000000e+00> : vector<16x32xf32>
    %5 = tpu.matmul %3, %4, %cst_5 {dimension_numbers = #tpu.dot_dimension_numbers<[1], [0], [0], [1], [0, 0, 1, 1], [], []>} : vector<16x17xbf16>, vector<17x32xbf16>, vector<16x32xf32> -> vector<16x32xf32>
    %cst_6 = arith.constant 0.000000e+00 : f32
    %6 = vector.broadcast %cst_6 : f32 to vector<16x32xf32>
    %7 = arith.maximumf %5, %6 : vector<16x32xf32>
    %8 = arith.truncf %7 : vector<16x32xf32> to vector<16x32xbf16>
    %c0_7 = arith.constant 0 : index
    %c0_8 = arith.constant 0 : index
    %9 = vector.load %arg4[%c0_7, %c0_8] : memref<16x33xbf16, #tpu.memory_space<vmem>>, vector<16x32xbf16>
    tpu.vector_store %arg4[%c0_7, %c0_8], %8 {strides = array<i32>} : memref<16x33xbf16, #tpu.memory_space<vmem>>, vector<16x32xbf16>,
    %cst_9 = arith.constant 1.000000e+00 : bf16
    %10 = vector.broadcast %cst_9 : bf16 to vector<16x1xbf16>
    %c0_10 = arith.constant 0 : index
    %c32 = arith.constant 32 : index
    %11 = vector.load %arg4[%c0_10, %c32] : memref<16x33xbf16, #tpu.memory_space<vmem>>, vector<16x1xbf16>
    tpu.vector_store %arg4[%c0_10, %c32], %10 {strides = array<i32>} : memref<16x33xbf16, #tpu.memory_space<vmem>>, vector<16x1xbf16>,
    return
  }
  func.func @transform_0(%arg0: i32) -> (i32, i32) {
    %c0_i32 = arith.constant 0 : i32
    %c0_i32_0 = arith.constant 0 : i32
    return %arg0, %c0_i32 : i32, i32
  }
  func.func @transform_1(%arg0: i32) -> (i32, i32) {
    %c0_i32 = arith.constant 0 : i32
    %c0_i32_0 = arith.constant 0 : i32
    %c0_i32_1 = arith.constant 0 : i32
    return %c0_i32, %c0_i32_0 : i32, i32
  }
  func.func @transform_2(%arg0: i32) -> (i32, i32) {
    %c0_i32 = arith.constant 0 : i32
    %c0_i32_0 = arith.constant 0 : i32
    %c0_i32_1 = arith.constant 0 : i32
    return %c0_i32, %c0_i32_0 : i32, i32
  }
  func.func @transform_3(%arg0: i32) -> (i32, i32) {
    %c0_i32 = arith.constant 0 : i32
    %c0_i32_0 = arith.constant 0 : i32
    return %arg0, %c0_i32 : i32, i32
  }
}

</mosaic_0001>

<bundles_post_ra>
// kernel: tpu_custom_call.1
= control target key start
LH: loop header
LB: loop body
LE: loop exit
PB: predicated region body
PF: predicated region fallthrough
CT: control target
= control target key end

     0   :  { %s499_s12 = smov 0   ;;  %s537_s0 = inlined_call_operand.vmem [shape: bf16[64,64], index: 0, kind: input, shape index: {}]   ;;  %s538_s1 = inlined_call_operand.vmem [shape: bf16[64,17], index: 1, kind: input, shape index: {}]   ;;  %s539_s2 = inlined_call_operand.vmem [shape: bf16[17,32], index: 2, kind: input, shape index: {}]   ;;  %s540_s3 = inlined_call_operand.vmem [shape: bf16[64,33], index: 3, kind: output, shape index: {}]  }
   0x1 LB: > { %s396_s13 = sadd.s32 4294967295, %s473_s12   ;;  %p400_p0 = scmp.ge.s32.totalorder %s473_s12, 1  ;;  %s473_s12 = sphi %s499_s12, %s13_s12  }
   0x2   : > { %p138_p1 = scmp.lt.s32.totalorder %s473_s12, 5 }
   0x4   : > { %p139_p2 = pnand %p400_p0, %p138_p1 }
   0x5   : > { %v460_v0 = vld [vmem:[%s538_s1] sm:$0xff] (!%p139_p2)   ;;  %v475_v1 = vmov (!%p139_p2), 0.0   ;;  %v461_v2 = vld [vmem:[%s538_s1 + $0x8] sm:$0xff] (!%p139_p2)   ;;  %vm476_vm0 = vmmov (!%p139_p2), 0   ;;  %s401_s18 = sshll.u32 (!%p139_p2), %s396_s13, 1  ;;  %v462_v4 = vld [vmem:[%s538_s1 + $0x10] sm:$0xff] (!%p139_p2)  }
   0x6   : > { %142 = sbr.rel (%p139_p2) target bundleno = 458 (0x1ca), region = 32  ;;  %428 = vmatprep.subr.bf16.mxu0 (!%p139_p2), %v475_v1  ;;  %440 = vmatprep.subr.bf16.mxu1 (!%p139_p2), %v475_v1  ;;  %p163_p3 = scmp.lt.s32.totalorder (!%p139_p2), %s401_s18, 7  ;;  %v465_v3 = vld [vmem:[%s539_s2] sm:$0xff] (!%p139_p2)   ;;  %v463_v5 = vld [vmem:[%s538_s1 + $0x18] sm:$0xff] (!%p139_p2)   ;;  %vm215_vm1 = vcmask (!%p139_p2), 523264   ;;  %vm277_vm2 = vcmask (!%p139_p2), 1040384  }
   0x7   : > { %429 = vmatpush3.bf16.msra.mxu0 (!%p139_p2), %v460_v0  ;;  %436 = vmatprep.mubr.msk.bf16.mxu0 (!%p139_p2), %vm476_vm0, %v475_v1  ;;  %v466_v7 = vld [vmem:[%s539_s2 + $0x8] ss:$0 sps:$4 sm:$0x11] (!%p139_p2)   ;;  %v477_v8 = vmov (!%p139_p2), 0   ;;  %vm273_vm3 = vcmask (!%p139_p2), 138240   ;;  %vm334_vm4 = vcmask (!%p139_p2), 257024  }
   0x8   : > { %430 = vmatprep.subr.bf16.mxu0 (!%p139_p2), %v475_v1  ;;  %444 = vmatprep.mubr.msk.bf16.mxu1 (!%p139_p2), %vm476_vm0, %v475_v1  ;;  %v279_v9 = vsel (!%p139_p2), %vm277_vm2, 65535, %v477_v8  ;;  %vm337_vm5 = vcmask (!%p139_p2), 265472   ;;  %v478_v24 = vmov (!%p139_p2), 1065369472  }
   0x9   : > { %441 = vmatpush3.bf16.msra.mxu1 (!%p139_p2), %v465_v3  ;;  %v281_v10 = vand.u32 (!%p139_p2), %v466_v7, %v279_v9 }
   0xa   : > { %442 = vmatprep.subr.bf16.mxu1 (!%p139_p2), %v475_v1 }
   0xb   : > { %431 = vmatpush3.bf16.msra.mxu0 (!%p139_p2), %v461_v2 }
   0xc   : > { %432 = vmatprep.subr.bf16.mxu0 (!%p139_p2), %v475_v1 }
   0xd   : > { %s542_s18 = smov (!%p163_p3, %s401_s18), 7  ;;  %443 = vmatpush3.bf16.msra.mxu1 %v281_v10 }
   0xe   : > { %s402_s23 = sshll.u32 %s542_s18, 2 }
   0xf   : > { %s166_s26 = scalar_lea.vmem %s537_s0, %s402_s23  ;;  %433 = vmatpush3.bf16.msra.mxu0 %v462_v4  ;;  %s172_s6 = scalar_lea.vmem %s540_s3, %s402_s23 }
  0x10   : > { %434 = vmatprep.subr.bf16.mxu0 %v475_v1  ;;  %v464_v6 = vld [vmem:[%s166_s26] sm:$0xff]  }
  0x13   : > { %435 = vmatpush3.bf16.msra.mxu0 %v463_v5 }
  0x16   : > { %437 = vmatmul.mubr.msk.bf16.vlgmr.msra.gmra.mrb[0].mxu0 %vm215_vm1, %v464_v6 }
  0xe9   : > { %v253_v11 = vpop.f32.mrb[0].mxu0 }
  0xea   : > { %v438_v12 = vpop.f32.mrb[1].mxu0 }
  0xeb   : > { %v256_v13 = vpop.f32.mrb[2].mxu0 }
  0xec   : > { %v260_v14 = vpack.c.bf16 %v256_v13, %v253_v11  ;;  %v439_v15 = vpop.f32.mrb[3].mxu0 }
  0xee   : > { %445 = vmatmul.mubr.msk.bf16.vlgmr.msra.gmra.mrb[0].mxu1 %vm273_vm3, %v260_v14 }
 0x1c1   : > { %v317_v16 = vpop.f32.mrb[0].mxu1 }
 0x1c2   : > { %v324_v17 = vmax.f32 %v317_v16, 0.0  ;;  %v446_v18 = vpop.f32.mrb[1].mxu1 }
 0x1c3   : > { %v320_v19 = vpop.f32.mrb[2].mxu1 }
 0x1c4   : > { %v418_v20 = vpack.c.bf16 %v324_v17, %v324_v17  ;;  %v325_v21 = vmax.f32 %v320_v19, 0.0  ;;  %v447_v22 = vpop.f32.mrb[3].mxu1 }
 0x1c6   : > { %335 = vst.msk [vmem:[%s172_s6] sm:$0xf] %vm334_vm4, %v418_v20  ;;  %v419_v23 = vpack.c.bf16 %v325_v21, %v325_v21 }
 0x1c7   : > { %338 = vst.msk [vmem:[%s172_s6] sm:$0xf] %vm337_vm5, %v478_v24 }
 0x1c8   : > { %336 = vst.msk [vmem:[%s172_s6 + $0x4] sm:$0xf] %vm334_vm4, %v419_v23 }
 0x1c9   : > { %339 = vst.msk [vmem:[%s172_s6 + $0x4] sm:$0xf] %vm337_vm5, %v478_v24 }
 0x1ca PF: > { %s13_s12 = sadd.s32 1, %s473_s12  }
 0x1cb   : > { %p10_p4 = scmp.ge.s32.totalorder %s13_s12, 6  }
 0x1cd   :  { %12 = sbr.rel (!%p10_p4) target bundleno = 1 (0x1), region = 62 }

</bundles_post_ra>
